<compile_context>
chip_gen: v7x
topology: tpu7x:2x2x1
jax: 0.10.0
libtpu: 0.0.40
codegen_flags: <defaults>
</compile_context>

<pallas_src>
import jax
import jax.numpy as jnp
from jax import lax
from jax.experimental import pallas as pl
from jax.experimental.pallas import tpu as pltpu

HIDDEN = 128          # hard-coded in the PyTorch module
GUMBEL_EPS = 1e-20
GAUSS_EPS = 1e-10


def _round_up(n, m):
    return ((n + m - 1) // m) * m


def _make_kernel(x_dim, y_dim, z_dim, temperature):
    pack_w = 3 * y_dim + 3 * z_dim
    out_w = _round_up(pack_w, 128)
    inv_t = 1.0 / float(temperature)

    def kernel(x_ref, noise_ref, w1_ref, w3_ref, w24_ref, wlog_ref, wmuvar_ref,
               bhid_ref, bsmall_ref, out_ref):
        x = x_ref[...]                                   # (B, x_dim) f32
        B = x.shape[0]

        def _softmax(a):
            a = a - jnp.max(a, axis=1, keepdims=True)
            e = jnp.exp(a)
            return e / jnp.sum(e, axis=1, keepdims=True)

        # ---------------- q(y|x) ----------------
        h = jnp.dot(x, w1_ref[...], preferred_element_type=jnp.float32) + bhid_ref[0:1, :]
        h = jnp.maximum(h, 0.0)
        h = jnp.dot(h, w24_ref[0], preferred_element_type=jnp.float32) + bhid_ref[1:2, :]
        h = jnp.maximum(h, 0.0)

        logits = (jnp.dot(h, wlog_ref[...], preferred_element_type=jnp.float32)
                  + bsmall_ref[:, :y_dim])               # (B, y_dim)
        prob = _softmax(logits)

        u = noise_ref[:, :y_dim]                          # Uniform(0,1)
        gumbel = -jnp.log(-jnp.log(u + GUMBEL_EPS) + GUMBEL_EPS)
        y_cat = _softmax((logits + gumbel) * inv_t)
        # TODO(synk): hard=1 (straight-through one-hot) not implemented; forward default is hard=0.

        # ---------------- q(z|x,y) ----------------
        xy = jnp.concatenate([x, y_cat], axis=1)          # (B, x_dim + y_dim)
        g = jnp.dot(xy, w3_ref[...], preferred_element_type=jnp.float32) + bhid_ref[2:3, :]
        g = jnp.maximum(g, 0.0)
        g = jnp.dot(g, w24_ref[1], preferred_element_type=jnp.float32) + bhid_ref[3:4, :]
        g = jnp.maximum(g, 0.0)

        # fused mu|var matmul: one MXU push, then split
        muvar = (jnp.dot(g, wmuvar_ref[...], preferred_element_type=jnp.float32)
                 + bsmall_ref[:, y_dim:])                 # (B, 2*z_dim)
        mu = muvar[:, :z_dim]
        pre = muvar[:, z_dim:]
        # numerically-stable softplus: max(x,0) + log1p(exp(-|x|))
        var = jnp.maximum(pre, 0.0) + jnp.log1p(jnp.exp(-jnp.abs(pre)))
        eps = noise_ref[:, y_dim:]                        # standard normal
        z = mu + eps * jnp.sqrt(var + GAUSS_EPS)

        # ---------------- single lane-dense output slab ----------------
        pieces = [logits, prob, y_cat, mu, var, z]
        if out_w > pack_w:
            pieces.append(jnp.zeros((B, out_w - pack_w), jnp.float32))
        out_ref[...] = jnp.concatenate(pieces, axis=1)    # (B, out_w), unmasked store

    return kernel, out_w


def inference_net_forward(x, noise, params, *, temperature=1.0):
    """x: (B, x_dim) f32.  noise: (B, y_dim + z_dim) f32 = [Uniform(0,1) | Normal(0,1)].
    params: per-layer weights stored pre-transposed as (in_features, out_features)."""
    B, x_dim = x.shape
    y_dim = params["w_logits"].shape[1]
    z_dim = params["w_mu"].shape[1]

    # ---- fuse params to cut input DMA count ----
    w24 = jnp.stack([params["w2"], params["w4"]], axis=0)                      # (2, 128, 128)
    w_muvar = jnp.concatenate([params["w_mu"], params["w_var"]], axis=1)       # (128, 2*z_dim)
    b_hidden = jnp.stack([params["b1"], params["b2"],
                          params["b3"], params["b4"]], axis=0)                 # (4, 128)
    b_small = jnp.concatenate([params["b_logits"],
                               params["b_mu"], params["b_var"]], axis=0)[None, :]  # (1, y+2z)

    kernel, out_w = _make_kernel(x_dim, y_dim, z_dim, temperature)

    vmem = pl.BlockSpec(memory_space=pltpu.MemorySpace.VMEM)
    packed = pl.pallas_call(
        kernel,
        out_shape=jax.ShapeDtypeStruct((B, out_w), jnp.float32),
        in_specs=[vmem] * 9,
        out_specs=vmem,
    )(x, noise, params["w1"], params["w3"], w24,
      params["w_logits"], w_muvar, b_hidden, b_small)

    y, z = y_dim, z_dim
    return {
        "logits":      packed[:, 0:y],
        "prob_cat":    packed[:, y:2 * y],
        "categorical": packed[:, 2 * y:3 * y],
        "mean":        packed[:, 3 * y:3 * y + z],
        "var":         packed[:, 3 * y + z:3 * y + 2 * z],
        "gaussian":    packed[:, 3 * y + 2 * z:3 * y + 3 * z],
    }


def init_params(key, x_dim, z_dim, y_dim, hidden=HIDDEN):
    """Mimics nn.Linear's uniform(-1/sqrt(fan_in), 1/sqrt(fan_in)) init."""
    def linear(k, fan_in, fan_out):
        kw, kb = jax.random.split(k)
        lim = 1.0 / (fan_in ** 0.5)
        w = jax.random.uniform(kw, (fan_in, fan_out), jnp.float32, -lim, lim)
        b = jax.random.uniform(kb, (fan_out,), jnp.float32, -lim, lim)
        return w, b

    ks = jax.random.split(key, 7)
    w1, b1 = linear(ks[0], x_dim, hidden)
    w2, b2 = linear(ks[1], hidden, hidden)
    w_logits, b_logits = linear(ks[2], hidden, y_dim)
    w3, b3 = linear(ks[3], x_dim + y_dim, hidden)
    w4, b4 = linear(ks[4], hidden, hidden)
    w_mu, b_mu = linear(ks[5], hidden, z_dim)
    w_var, b_var = linear(ks[6], hidden, z_dim)
    return {"w1": w1, "b1": b1, "w2": w2, "b2": b2,
            "w_logits": w_logits, "b_logits": b_logits,
            "w3": w3, "b3": b3, "w4": w4, "b4": b4,
            "w_mu": w_mu, "b_mu": b_mu, "w_var": w_var, "b_var": b_var}


def _reference_forward(x, noise, p, temperature=1.0):
    hi = lax.Precision.HIGHEST
    relu = jax.nn.relu
    h = relu(jnp.dot(x, p["w1"], precision=hi) + p["b1"])
    h = relu(jnp.dot(h, p["w2"], precision=hi) + p["b2"])
    logits = jnp.dot(h, p["w_logits"], precision=hi) + p["b_logits"]
    prob = jax.nn.softmax(logits, axis=-1)
    y_dim = logits.shape[1]
    u = noise[:, :y_dim]
    gumbel = -jnp.log(-jnp.log(u + GUMBEL_EPS) + GUMBEL_EPS)
    y = jax.nn.softmax((logits + gumbel) / temperature, axis=-1)
    xy = jnp.concatenate([x, y], axis=1)
    g = relu(jnp.dot(xy, p["w3"], precision=hi) + p["b3"])
    g = relu(jnp.dot(g, p["w4"], precision=hi) + p["b4"])
    mu = jnp.dot(g, p["w_mu"], precision=hi) + p["b_mu"]
    var = jax.nn.softplus(jnp.dot(g, p["w_var"], precision=hi) + p["b_var"])
    eps = noise[:, y_dim:]
    z = mu + eps * jnp.sqrt(var + GAUSS_EPS)
    return {"mean": mu, "var": var, "gaussian": z,
            "logits": logits, "prob_cat": prob, "categorical": y}


if __name__ == "__main__":
    key = jax.random.PRNGKey(0)
    kx, ku, ke, kp = jax.random.split(key, 4)

    B, x_dim, z_dim, y_dim = 8, 64, 32, 16
    x = jax.random.normal(kx, (B, x_dim), jnp.float32)
    u = jax.random.uniform(ku, (B, y_dim), jnp.float32)            # Gumbel base uniform
    eps = jax.random.normal(ke, (B, z_dim), jnp.float32)           # Gaussian reparam noise
    noise = jnp.concatenate([u, eps], axis=1)
    params = init_params(kp, x_dim, z_dim, y_dim)

    out = inference_net_forward(x, noise, params, temperature=1.0)
    jax.block_until_ready(out)

    ref = _reference_forward(x, noise, params, temperature=1.0)
    for name in ("mean", "var", "gaussian", "logits", "prob_cat", "categorical"):
        assert out[name].shape == ref[name].shape, name
        assert jnp.allclose(out[name], ref[name], rtol=2e-4, atol=1e-5), name

    print("KERNEL_OK")
</pallas_src>

<mosaic_0001>
module attributes {stable_mosaic.version = 11 : i64} {
  func.func @kernel(%arg0: memref<8x64xf32, #tpu.memory_space<vmem>>, %arg1: memref<8x48xf32, #tpu.memory_space<vmem>>, %arg2: memref<64x128xf32, #tpu.memory_space<vmem>>, %arg3: memref<80x128xf32, #tpu.memory_space<vmem>>, %arg4: memref<2x128x128xf32, #tpu.memory_space<vmem>>, %arg5: memref<128x16xf32, #tpu.memory_space<vmem>>, %arg6: memref<128x64xf32, #tpu.memory_space<vmem>>, %arg7: memref<4x128xf32, #tpu.memory_space<vmem>>, %arg8: memref<1x80xf32, #tpu.memory_space<vmem>>, %arg9: memref<8x256xf32, #tpu.memory_space<vmem>>) attributes {dimension_semantics = [], scalar_prefetch = 0 : i64, scratch_operands = 0 : i64, tpu.core_type = #tpu.core_type<tc>} {
    %c0 = arith.constant 0 : index
    %c0_0 = arith.constant 0 : index
    %0 = vector.load %arg0[%c0, %c0_0] : memref<8x64xf32, #tpu.memory_space<vmem>>, vector<8x64xf32>
    %c0_1 = arith.constant 0 : index
    %c0_2 = arith.constant 0 : index
    %1 = vector.load %arg2[%c0_1, %c0_2] : memref<64x128xf32, #tpu.memory_space<vmem>>, vector<64x128xf32>
    %cst = arith.constant dense<0.000000e+00> : vector<8x128xf32>
    %2 = tpu.matmul %0, %1, %cst {dimension_numbers = #tpu.dot_dimension_numbers<[1], [0], [0], [1], [0, 0, 1, 1], [], []>} : vector<8x64xf32>, vector<64x128xf32>, vector<8x128xf32> -> vector<8x128xf32>
    %c0_3 = arith.constant 0 : index
    %c0_4 = arith.constant 0 : index
    %3 = vector.load %arg7[%c0_3, %c0_4] : memref<4x128xf32, #tpu.memory_space<vmem>>, vector<1x128xf32>
    %4 = vector.broadcast %3 : vector<1x128xf32> to vector<8x128xf32>
    %5 = arith.addf %2, %4 : vector<8x128xf32>
    %cst_5 = arith.constant 0.000000e+00 : f32
    %6 = vector.broadcast %cst_5 : f32 to vector<8x128xf32>
    %7 = arith.maximumf %5, %6 : vector<8x128xf32>
    %c0_6 = arith.constant 0 : index
    %c0_7 = arith.constant 0 : index
    %c0_8 = arith.constant 0 : index
    %8 = vector.load %arg4[%c0_6, %c0_7, %c0_8] : memref<2x128x128xf32, #tpu.memory_space<vmem>>, vector<1x128x128xf32>
    %9 = vector.shape_cast %8 : vector<1x128x128xf32> to vector<128x128xf32>
    %cst_9 = arith.constant dense<0.000000e+00> : vector<8x128xf32>
    %10 = tpu.matmul %7, %9, %cst_9 {dimension_numbers = #tpu.dot_dimension_numbers<[1], [0], [0], [1], [0, 0, 1, 1], [], []>} : vector<8x128xf32>, vector<128x128xf32>, vector<8x128xf32> -> vector<8x128xf32>
    %c1 = arith.constant 1 : index
    %c0_10 = arith.constant 0 : index
    %11 = vector.load %arg7[%c1, %c0_10] : memref<4x128xf32, #tpu.memory_space<vmem>>, vector<1x128xf32>
    %12 = vector.broadcast %11 : vector<1x128xf32> to vector<8x128xf32>
    %13 = arith.addf %10, %12 : vector<8x128xf32>
    %cst_11 = arith.constant 0.000000e+00 : f32
    %14 = vector.broadcast %cst_11 : f32 to vector<8x128xf32>
    %15 = arith.maximumf %13, %14 : vector<8x128xf32>
    %c0_12 = arith.constant 0 : index
    %c0_13 = arith.constant 0 : index
    %16 = vector.load %arg5[%c0_12, %c0_13] : memref<128x16xf32, #tpu.memory_space<vmem>>, vector<128x16xf32>
    %cst_14 = arith.constant dense<0.000000e+00> : vector<8x16xf32>
    %17 = tpu.matmul %15, %16, %cst_14 {dimension_numbers = #tpu.dot_dimension_numbers<[1], [0], [0], [1], [0, 0, 1, 1], [], []>} : vector<8x128xf32>, vector<128x16xf32>, vector<8x16xf32> -> vector<8x16xf32>
    %c0_15 = arith.constant 0 : index
    %c0_16 = arith.constant 0 : index
    %18 = vector.load %arg8[%c0_15, %c0_16] : memref<1x80xf32, #tpu.memory_space<vmem>>, vector<1x16xf32>
    %19 = vector.broadcast %18 : vector<1x16xf32> to vector<8x16xf32>
    %20 = arith.addf %17, %19 : vector<8x16xf32>
    %cst_17 = arith.constant dense<0xFF800000> : vector<8xf32>
    %21 = vector.multi_reduction <maximumf>, %20, %cst_17 [1] : vector<8x16xf32> to vector<8xf32>
    %22 = vector.shape_cast %21 : vector<8xf32> to vector<8x1xf32>
    %23 = vector.broadcast %22 : vector<8x1xf32> to vector<8x16xf32>
    %24 = arith.subf %20, %23 : vector<8x16xf32>
    %25 = math.exp %24 : vector<8x16xf32>
    %cst_18 = arith.constant dense<0.000000e+00> : vector<8xf32>
    %26 = vector.multi_reduction <add>, %25, %cst_18 [1] : vector<8x16xf32> to vector<8xf32>
    %27 = vector.shape_cast %26 : vector<8xf32> to vector<8x1xf32>
    %28 = vector.broadcast %27 : vector<8x1xf32> to vector<8x16xf32>
    %29 = arith.divf %25, %28 : vector<8x16xf32>
    %c0_19 = arith.constant 0 : index
    %c0_20 = arith.constant 0 : index
    %30 = vector.load %arg1[%c0_19, %c0_20] : memref<8x48xf32, #tpu.memory_space<vmem>>, vector<8x16xf32>
    %cst_21 = arith.constant 9.99999968E-21 : f32
    %31 = vector.broadcast %cst_21 : f32 to vector<8x16xf32>
    %32 = arith.addf %30, %31 : vector<8x16xf32>
    %33 = math.log %32 : vector<8x16xf32>
    %cst_22 = arith.constant 0.000000e+00 : f32
    %34 = vector.broadcast %cst_22 : f32 to vector<8x16xf32>
    %35 = arith.subf %34, %33 : vector<8x16xf32>
    %cst_23 = arith.constant 9.99999968E-21 : f32
    %36 = vector.broadcast %cst_23 : f32 to vector<8x16xf32>
    %37 = arith.addf %35, %36 : vector<8x16xf32>
    %38 = math.log %37 : vector<8x16xf32>
    %cst_24 = arith.constant 0.000000e+00 : f32
    %39 = vector.broadcast %cst_24 : f32 to vector<8x16xf32>
    %40 = arith.subf %39, %38 : vector<8x16xf32>
    %41 = arith.addf %20, %40 : vector<8x16xf32>
    %cst_25 = arith.constant 1.000000e+00 : f32
    %42 = vector.broadcast %cst_25 : f32 to vector<8x16xf32>
    %43 = arith.mulf %41, %42 : vector<8x16xf32>
    %cst_26 = arith.constant dense<0xFF800000> : vector<8xf32>
    %44 = vector.multi_reduction <maximumf>, %43, %cst_26 [1] : vector<8x16xf32> to vector<8xf32>
    %45 = vector.shape_cast %44 : vector<8xf32> to vector<8x1xf32>
    %46 = vector.broadcast %45 : vector<8x1xf32> to vector<8x16xf32>
    %47 = arith.subf %43, %46 : vector<8x16xf32>
    %48 = math.exp %47 : vector<8x16xf32>
    %cst_27 = arith.constant dense<0.000000e+00> : vector<8xf32>
    %49 = vector.multi_reduction <add>, %48, %cst_27 [1] : vector<8x16xf32> to vector<8xf32>
    %50 = vector.shape_cast %49 : vector<8xf32> to vector<8x1xf32>
    %51 = vector.broadcast %50 : vector<8x1xf32> to vector<8x16xf32>
    %52 = arith.divf %48, %51 : vector<8x16xf32>
    %53 = tpu.concatenate %0, %52 in 1 : vector<8x64xf32>, vector<8x16xf32> -> vector<8x80xf32>
    %c0_28 = arith.constant 0 : index
    %c0_29 = arith.constant 0 : index
    %54 = vector.load %arg3[%c0_28, %c0_29] : memref<80x128xf32, #tpu.memory_space<vmem>>, vector<80x128xf32>
    %cst_30 = arith.constant dense<0.000000e+00> : vector<8x128xf32>
    %55 = tpu.matmul %53, %54, %cst_30 {dimension_numbers = #tpu.dot_dimension_numbers<[1], [0], [0], [1], [0, 0, 1, 1], [], []>} : vector<8x80xf32>, vector<80x128xf32>, vector<8x128xf32> -> vector<8x128xf32>
    %c2 = arith.constant 2 : index
    %c0_31 = arith.constant 0 : index
    %56 = vector.load %arg7[%c2, %c0_31] : memref<4x128xf32, #tpu.memory_space<vmem>>, vector<1x128xf32>
    %57 = vector.broadcast %56 : vector<1x128xf32> to vector<8x128xf32>
    %58 = arith.addf %55, %57 : vector<8x128xf32>
    %cst_32 = arith.constant 0.000000e+00 : f32
    %59 = vector.broadcast %cst_32 : f32 to vector<8x128xf32>
    %60 = arith.maximumf %58, %59 : vector<8x128xf32>
    %c1_33 = arith.constant 1 : index
    %c0_34 = arith.constant 0 : index
    %c0_35 = arith.constant 0 : index
    %61 = vector.load %arg4[%c1_33, %c0_34, %c0_35] : memref<2x128x128xf32, #tpu.memory_space<vmem>>, vector<1x128x128xf32>
    %62 = vector.shape_cast %61 : vector<1x128x128xf32> to vector<128x128xf32>
    %cst_36 = arith.constant dense<0.000000e+00> : vector<8x128xf32>
    %63 = tpu.matmul %60, %62, %cst_36 {dimension_numbers = #tpu.dot_dimension_numbers<[1], [0], [0], [1], [0, 0, 1, 1], [], []>} : vector<8x128xf32>, vector<128x128xf32>, vector<8x128xf32> -> vector<8x128xf32>
    %c3 = arith.constant 3 : index
    %c0_37 = arith.constant 0 : index
    %64 = vector.load %arg7[%c3, %c0_37] : memref<4x128xf32, #tpu.memory_space<vmem>>, vector<1x128xf32>
    %65 = vector.broadcast %64 : vector<1x128xf32> to vector<8x128xf32>
    %66 = arith.addf %63, %65 : vector<8x128xf32>
    %cst_38 = arith.constant 0.000000e+00 : f32
    %67 = vector.broadcast %cst_38 : f32 to vector<8x128xf32>
    %68 = arith.maximumf %66, %67 : vector<8x128xf32>
    %c0_39 = arith.constant 0 : index
    %c0_40 = arith.constant 0 : index
    %69 = vector.load %arg6[%c0_39, %c0_40] : memref<128x64xf32, #tpu.memory_space<vmem>>, vector<128x64xf32>
    %cst_41 = arith.constant dense<0.000000e+00> : vector<8x64xf32>
    %70 = tpu.matmul %68, %69, %cst_41 {dimension_numbers = #tpu.dot_dimension_numbers<[1], [0], [0], [1], [0, 0, 1, 1], [], []>} : vector<8x128xf32>, vector<128x64xf32>, vector<8x64xf32> -> vector<8x64xf32>
    %c0_42 = arith.constant 0 : index
    %c16 = arith.constant 16 : index
    %71 = vector.load %arg8[%c0_42, %c16] : memref<1x80xf32, #tpu.memory_space<vmem>>, vector<1x64xf32>
    %72 = vector.broadcast %71 : vector<1x64xf32> to vector<8x64xf32>
    %73 = arith.addf %70, %72 : vector<8x64xf32>
    %74 = vector.extract_strided_slice %73 {offsets = [0, 0], sizes = [8, 32], strides = [1, 1]} : vector<8x64xf32> to vector<8x32xf32>
    %75 = vector.extract_strided_slice %73 {offsets = [0, 32], sizes = [8, 32], strides = [1, 1]} : vector<8x64xf32> to vector<8x32xf32>
    %cst_43 = arith.constant 0.000000e+00 : f32
    %76 = vector.broadcast %cst_43 : f32 to vector<8x32xf32>
    %77 = arith.maximumf %75, %76 : vector<8x32xf32>
    %78 = math.absf %75 : vector<8x32xf32>
    %cst_44 = arith.constant 0.000000e+00 : f32
    %79 = vector.broadcast %cst_44 : f32 to vector<8x32xf32>
    %80 = arith.subf %79, %78 : vector<8x32xf32>
    %81 = math.exp %80 : vector<8x32xf32>
    %82 = math.log1p %81 : vector<8x32xf32>
    %83 = arith.addf %77, %82 : vector<8x32xf32>
    %c0_45 = arith.constant 0 : index
    %c16_46 = arith.constant 16 : index
    %84 = vector.load %arg1[%c0_45, %c16_46] : memref<8x48xf32, #tpu.memory_space<vmem>>, vector<8x32xf32>
    %cst_47 = arith.constant 1.000000e-10 : f32
    %85 = vector.broadcast %cst_47 : f32 to vector<8x32xf32>
    %86 = arith.addf %83, %85 : vector<8x32xf32>
    %87 = math.sqrt %86 : vector<8x32xf32>
    %88 = arith.mulf %84, %87 : vector<8x32xf32>
    %89 = arith.addf %74, %88 : vector<8x32xf32>
    %cst_48 = arith.constant 0.000000e+00 : f32
    %90 = vector.broadcast %cst_48 : f32 to vector<8x112xf32>
    %91 = tpu.concatenate %20, %29, %52, %74, %83, %89, %90 in 1 : vector<8x16xf32>, vector<8x16xf32>, vector<8x16xf32>, vector<8x32xf32>, vector<8x32xf32>, vector<8x32xf32>, vector<8x112xf32> -> vector<8x256xf32>
    %c0_49 = arith.constant 0 : index
    %c0_50 = arith.constant 0 : index
    %92 = vector.load %arg9[%c0_49, %c0_50] : memref<8x256xf32, #tpu.memory_space<vmem>>, vector<8x256xf32>
    tpu.vector_store %arg9[%c0_49, %c0_50], %91 {strides = array<i32>} : memref<8x256xf32, #tpu.memory_space<vmem>>, vector<8x256xf32>,
    return
  }
}

</mosaic_0001>

<bundles_post_ra>
// kernel: tpu_custom_call.1
= control target key start
LH: loop header
LB: loop body
LE: loop exit
PB: predicated region body
PF: predicated region fallthrough
CT: control target
= control target key end

     0   :  { %14 = vsyncpa [#allocation3], 0  ;;  %s1713_s0 = inlined_call_operand.hbm [shape: f32[8,64], index: 0, kind: input, shape index: {}]   ;;  %s1714_s1 = inlined_call_operand.hbm [shape: f32[8,48], index: 1, kind: input, shape index: {}]   ;;  %s1715_s2 = inlined_call_operand.hbm [shape: f32[64,128], index: 2, kind: input, shape index: {}]   ;;  %s1716_s3 = inlined_call_operand.vmem [shape: f32[80,128], index: 3, kind: input, shape index: {}]   ;;  %s1717_s4 = inlined_call_operand.vmem [shape: f32[2,128,128], index: 4, kind: input, shape index: {}]   ;;  %s1718_s5 = inlined_call_operand.vmem [shape: f32[128,16], index: 5, kind: input, shape index: {}]   ;;  %s1719_s6 = inlined_call_operand.vmem [shape: f32[128,64], index: 6, kind: input, shape index: {}]   ;;  %s1720_s7 = inlined_call_operand.vmem [shape: f32[4,128], index: 7, kind: input, shape index: {}]   ;;  %s1721_s8 = inlined_call_operand.vmem [shape: f32[1,80], index: 8, kind: input, shape index: {}]   ;;  %s1722_s9 = inlined_call_operand.hbm [shape: f32[8,256], index: 9, kind: output, shape index: {}]  }
   0x1   :  { %15 = vsyncpa [#allocation6], 0 }
   0x2   :  { %16 = vsyncpa [#allocation4], 0  ;;  %s1275_s30 = smov [#allocation5]   ;;  %s1276_s11 = smov [#allocation2]  }
   0x3   :  { %s33_s10 = sshll.u32 %s1275_s30, 4  ;;  %s23_s12 = sshll.u32 %s1276_s11, 4  ;;  %s34_s10 = int_to_ptr.vmem [resolvable:$true] %s33_s10  ;;  %s24_s12 = int_to_ptr.vmem [resolvable:$true] %s23_s12 }
   0x4   :  { %s1181_s15 = scalar_lea.hbm %s1714_s1, 128 }
   0x5   :  { %p1182_p0 = scmp.ne.s32.totalorder %s1714_s1, %s1181_s15  ;;  %p1185_p1 = scmp.lt.u32.totalorder %s1181_s15, %s1714_s1 }
   0x7   :  { %p1187_p2 = pnand %p1185_p1, %p1182_p0 }
   0x9   :  { %1190 = shalt.err (!%p1187_p2)
}
   0xa   :  { %s1191_s20 = scalar_lea.vmem %s34_s10, 128  ;;  %p1196_p4 = scmp.lt.s32.totalorder %s34_s10, %s34_s10 }
   0xb   :  { %p1192_p3 = scmp.ne.s32.totalorder %s34_s10, %s1191_s20  ;;  %p1197_p5 = scmp.lt.s32.totalorder %s1191_s20, %s1191_s20 }
   0xd   :  { %p1198_p6 = por %p1197_p5, %p1196_p4 }
   0xf   :  { %p1199_p7 = pnand %p1198_p6, %p1192_p3 }
  0x11   :  { %1202 = shalt.err (!%p1199_p7)
}
  0x12   :  { %36 = dma.hbm_to_vmem [thread:$0]  %s1714_s1, 128, %s34_s10, [#allocation6]  }
  0x13   :  { %s1203_s25 = scalar_lea.hbm %s1713_s0, 128 }
  0x14   :  { %p1204_p8 = scmp.ne.s32.totalorder %s1713_s0, %s1203_s25  ;;  %p1207_p9 = scmp.lt.u32.totalorder %s1203_s25, %s1713_s0 }
  0x16   :  { %p1209_p10 = pnand %p1207_p9, %p1204_p8 }
  0x18   :  { %1212 = shalt.err (!%p1209_p10)
}
  0x19   :  { %s1213_s30 = scalar_lea.vmem %s24_s12, 128  ;;  %p1218_p12 = scmp.lt.s32.totalorder %s24_s12, %s24_s12 }
  0x1a   :  { %p1214_p11 = scmp.ne.s32.totalorder %s24_s12, %s1213_s30  ;;  %p1219_p13 = scmp.lt.s32.totalorder %s1213_s30, %s1213_s30 }
  0x1c   :  { %p1220_p0 = por %p1219_p13, %p1218_p12 }
  0x1e   :  { %p1221_p1 = pnand %p1220_p0, %p1214_p11 }
  0x20   :  { %1224 = shalt.err (!%p1221_p1)
}
  0x21   :  { %26 = dma.hbm_to_vmem [thread:$0]  %s1713_s0, 128, %s24_s12, [#allocation3]  }
  0x22   :  { %s1277_s11 = smov [#allocation7]   ;;  %s1225_s16 = scalar_lea.hbm %s1715_s2, 1024 }
  0x23   :  { %s42_s13 = sshll.u32 %s1277_s11, 4  ;;  %p1226_p2 = scmp.ne.s32.totalorder %s1715_s2, %s1225_s16  ;;  %s43_s13 = int_to_ptr.vmem [resolvable:$true] %s42_s13 }
  0x24   :  { %p1229_p3 = scmp.lt.u32.totalorder %s1225_s16, %s1715_s2 }
  0x26   :  { %p1231_p4 = pnand %p1229_p3, %p1226_p2 }
  0x28   :  { %1234 = shalt.err (!%p1231_p4)
}
  0x29   :  { %s1235_s21 = scalar_lea.vmem %s43_s13, 1024  ;;  %p1240_p6 = scmp.lt.s32.totalorder %s43_s13, %s43_s13 }
  0x2a   :  { %p1236_p5 = scmp.ne.s32.totalorder %s43_s13, %s1235_s21  ;;  %p1241_p7 = scmp.lt.s32.totalorder %s1235_s21, %s1235_s21 }
  0x2c   :  { %p1242_p8 = por %p1241_p7, %p1240_p6 }
  0x2e   :  { %p1243_p9 = pnand %p1242_p8, %p1236_p5 }
  0x30   :  { %1246 = shalt.err (!%p1243_p9)
}
  0x31   :  { %s1278_s0 = smov 128   ;;  %s1279_s12 = smov 8  }
  0x32   :  { %48 = dma.hbm_to_vmem [thread:$0]  %s1715_s2, 1024, %s43_s13, [#allocation6], %s1278_s0, %s1278_s0, %s1279_s12  }
  0x33   :  { %1269 = dma.done.wait [#allocation3], 128  }
  0x34   :  { %1270 = vsyncadd [#allocation3], 4294967168 }
  0x35   :  { %1271 = dma.done.wait [#allocation6], 1152  }
  0x36   :  { %1272 = vsyncadd [#allocation6], 4294966144  ;;  %v1280_v0 = vmov 0.0|0.0   ;;  %vm1281_vm0 = vmmov 0   ;;  %v1282_v1 = vmov 0.0   ;;  %v71_v2 = vld [vmem:[#allocation7] sm:$0xff] }
  0x37   :  { %1026 = vmatprep.subr.bf16.mxu0 %v1280_v0  ;;  %860 = vmatprep.mubr.msk.f32.mxu0 %vm1281_vm0, %v1282_v1  ;;  %v72_v3 = vld [vmem:[#allocation7 + $0x8] sm:$0xff]  ;;  %v73_v4 = vld [vmem:[#allocation7 + $0x10] sm:$0xff]  ;;  %v74_v6 = vld [vmem:[#allocation7 + $0x18] sm:$0xff]  ;;  %vm84_vm1 = vcmask 523264   ;;  %vm344_vm2 = vcmask 130048   ;;  %s1283_s18 = smov 64  }
  0x38   :  { %1038 = vmatprep.subr.bf16.mxu1 %v1280_v0  ;;  %895 = vmatprep.mubr.msk.f32.mxu1 %vm1281_vm0, %v1282_v1  ;;  %v1027_v5 = vpack.c.bf16 %v72_v3, %v71_v2  ;;  %v1030_v7 = vpack.c.bf16 %v74_v6, %v73_v4  ;;  %v159_v8 = vld [vmem:[%s1717_s4] sm:$0xff]  ;;  %v160_v9 = vld [vmem:[%s1717_s4 + $0x8] sm:$0xff]  ;;  %v161_v10 = vld [vmem:[%s1717_s4 + $0x10] sm:$0xff]  ;;  %vm397_vm3 = vcmask 654336   ;;  %s1284_s11 = smov 16   ;;  %s1285_s25 = smov 112  }
  0x39   :  { %v75_v11 = vld [vmem:[#allocation7 + $0x20] sm:$0xff]  ;;  %v76_v12 = vld [vmem:[#allocation7 + $0x28] sm:$0xff]  ;;  %v1039_v13 = vpack.c.bf16 %v160_v9, %v159_v8  ;;  %v163_v17 = vld [vmem:[%s1717_s4 + $0x20] sm:$0xff]  ;;  %vm707_vm7 = vcmask 261120   ;;  %vm709_vm8 = vcmask 392192   ;;  %s1288_s27 = smov [#allocation8]  }
  0x3a   :  { %1028 = vmatpush3.bf16.msra.mxu0 %v1027_v5  ;;  %v162_v14 = vld [vmem:[%s1717_s4 + $0x18] sm:$0xff]  ;;  %v1033_v16 = vpack.c.bf16 %v76_v12, %v75_v11  ;;  %v164_v18 = vld [vmem:[%s1717_s4 + $0x28] sm:$0xff]  ;;  %v77_v19 = vld [vmem:[#allocation7 + $0x30] sm:$0xff]  ;;  %s723_s28 = sshll.u32 %s1288_s27, 4  ;;  %vm712_vm9 = vcmask 916480   ;;  %s724_s28 = int_to_ptr.vmem [resolvable:$true] %s723_s28 }
  0x3b   :  { %1029 = vmatprep.subr.bf16.mxu0 %v1280_v0  ;;  %1040 = vmatpush3.bf16.msra.mxu1 %v1039_v13  ;;  %v1042_v15 = vpack.c.bf16 %v162_v14, %v161_v10  ;;  %v78_v20 = vld [vmem:[#allocation7 + $0x38] sm:$0xff]  ;;  %v1045_v21 = vpack.c.bf16 %v164_v18, %v163_v17  ;;  %v165_v23 = vld [vmem:[%s1717_s4 + $0x30] sm:$0xff]  ;;  %v166_v24 = vld [vmem:[%s1717_s4 + $0x38] sm:$0xff]  ;;  %s1247_s29 = scalar_lea.vmem %s724_s28, 256  ;;  %p1252_p11 = scmp.lt.s32.totalorder %s724_s28, %s724_s28 }
  0x3c   :  { %1041 = vmatprep.subr.bf16.mxu1 %v1280_v0  ;;  %v1036_v22 = vpack.c.bf16 %v78_v20, %v77_v19  ;;  %v1048_v25 = vpack.c.bf16 %v166_v24, %v165_v23  ;;  %v1410_v26 = vld [vmem:[#allocation2] sm:$0xff]  ;;  %v168_v28 = vld [vmem:[%s1717_s4 + $0x48] sm:$0xff]  ;;  %v169_v30 = vld [vmem:[%s1717_s4 + $0x50] sm:$0xff]  ;;  %p1248_p10 = scmp.ne.s32.totalorder %s724_s28, %s1247_s29  ;;  %p1253_p12 = scmp.lt.s32.totalorder %s1247_s29, %s1247_s29 }
  0x3d   :  { %v167_v27 = vld [vmem:[%s1717_s4 + $0x40] sm:$0xff]  ;;  %v170_v31 = vld [vmem:[%s1717_s4 + $0x58] sm:$0xff]  ;;  %v172_v34 = vld [vmem:[%s1717_s4 + $0x68] sm:$0xff] }
  0x3e   :  { %1031 = vmatpush3.bf16.msra.mxu0 %v1030_v7  ;;  %v1051_v29 = vpack.c.bf16 %v168_v28, %v167_v27  ;;  %v1054_v32 = vpack.c.bf16 %v170_v31, %v169_v30  ;;  %v171_v33 = vld [vmem:[%s1717_s4 + $0x60] sm:$0xff]  ;;  %v173_v36 = vld [vmem:[%s1717_s4 + $0x70] sm:$0xff]  ;;  %v174_v37 = vld [vmem:[%s1717_s4 + $0x78] sm:$0xff]  ;;  %p1254_p13 = por %p1253_p12, %p1252_p11 }
  0x3f   :  { %1032 = vmatprep.subr.bf16.mxu0 %v1280_v0  ;;  %1043 = vmatpush3.bf16.msra.mxu1 %v1042_v15  ;;  %v1057_v35 = vpack.c.bf16 %v172_v34, %v171_v33  ;;  %v1060_v38 = vpack.c.bf16 %v174_v37, %v173_v36  ;;  %v251_v39 = vld [vmem:[%s1718_s5] sm:$0xff]  ;;  %v252_v40 = vld [vmem:[%s1718_s5 + $0x8] sm:$0xff]  ;;  %v253_v41 = vld [vmem:[%s1718_s5 + $0x10] sm:$0xff] }
  0x40   :  { %1044 = vmatprep.subr.bf16.mxu1 %v1280_v0  ;;  %v1063_v42 = vpack.c.bf16 %v252_v40, %v251_v39  ;;  %v254_v43 = vld [vmem:[%s1718_s5 + $0x18] sm:$0xff]  ;;  %v255_v45 = vld [vmem:[%s1718_s5 + $0x20] sm:$0xff]  ;;  %v256_v46 = vld [vmem:[%s1718_s5 + $0x28] sm:$0xff]  ;;  %p1255_p0 = pnand %p1254_p13, %p1248_p10 }
  0x41   :  { %v1066_v44 = vpack.c.bf16 %v254_v43, %v253_v41  ;;  %v1069_v47 = vpack.c.bf16 %v256_v46, %v255_v45  ;;  %v257_v48 = vld [vmem:[%s1718_s5 + $0x30] sm:$0xff]  ;;  %v258_v49 = vld [vmem:[%s1718_s5 + $0x38] sm:$0xff]  ;;  %v259_v51 = vld [vmem:[%s1718_s5 + $0x40] sm:$0xff] }
  0x42   :  { %1034 = vmatpush3.bf16.msra.mxu0 %v1033_v16  ;;  %v1072_v50 = vpack.c.bf16 %v258_v49, %v257_v48  ;;  %v260_v52 = vld [vmem:[%s1718_s5 + $0x48] sm:$0xff]  ;;  %v261_v54 = vld [vmem:[%s1718_s5 + $0x50] sm:$0xff]  ;;  %v262_v55 = vld [vmem:[%s1718_s5 + $0x58] sm:$0xff] }
  0x43   :  { %1035 = vmatprep.subr.bf16.mxu0 %v1280_v0  ;;  %1046 = vmatpush3.bf16.msra.mxu1 %v1045_v21  ;;  %v1075_v53 = vpack.c.bf16 %v260_v52, %v259_v51  ;;  %v1078_v56 = vpack.c.bf16 %v262_v55, %v261_v54  ;;  %v263_v57 = vld [vmem:[%s1718_s5 + $0x60] sm:$0xff]  ;;  %v264_v58 = vld [vmem:[%s1718_s5 + $0x68] sm:$0xff]  ;;  %v265_v3 = vld [vmem:[%s1718_s5 + $0x70] sm:$0xff] }
  0x44   :  { %1047 = vmatprep.subr.bf16.mxu1 %v1280_v0  ;;  %v1081_v59 = vpack.c.bf16 %v264_v58, %v263_v57  ;;  %v733_v60 = vld [vmem:[%s1720_s7] ss:$0 sm:$0xff]  ;;  %v266_v4 = vld [vmem:[%s1718_s5 + $0x78] sm:$0xff]  ;;  %v735_v6 = vld [vmem:[%s1720_s7 + $0x1] ss:$0 sm:$0xff] }
  0x45   :  { %v1084_v5 = vpack.c.bf16 %v266_v4, %v265_v3  ;;  %v1513_v11 = vld [vmem:[#allocation5] sm:$0xff]  ;;  %v1519_v19 = vld [vmem:[%s1721_s8] ss:$0 sm:$0xff]  ;;  %v385_v37 = vld [vmem:[%s1716_s3 + $0x18] sm:$0xff] }
  0x46   :  { %1037 = vmatpush3.bf16.msra.mxu0 %v1036_v22  ;;  %v357_v12 = vadd.f32 1e-20, %v1513_v11  ;;  %v382_v33 = vld [vmem:[%s1716_s3] sm:$0xff]  ;;  %v383_v34 = vld [vmem:[%s1716_s3 + $0x8] sm:$0xff]  ;;  %v389_v43 = vld [vmem:[%s1716_s3 + $0x38] sm:$0xff] }
  0x47   :  { %1062 = vmatprep.subr.bf16.mxu0 %v1280_v0  ;;  %1049 = vmatpush3.bf16.msra.mxu1 %v1048_v25  ;;  %v1087_v36 = vpack.c.bf16 %v383_v34, %v382_v33  ;;  %v386_v39 = vld [vmem:[%s1716_s3 + $0x20] sm:$0xff]  ;;  %v387_v40 = vld [vmem:[%s1716_s3 + $0x28] sm:$0xff]  ;;  %v745_v4 = vld [vmem:[%s1717_s4 + $0xb0] sm:$0xff] }
  0x48   :  { %1050 = vmatprep.subr.bf16.mxu1 %v1280_v0  ;;  %1163 = vlog2.f32 %v357_v12  ;;  %v1093_v41 = vpack.c.bf16 %v387_v40, %v386_v39  ;;  %v390_v45 = vld [vmem:[%s1716_s3 + $0x40] sm:$0xff]  ;;  %v391_v46 = vld [vmem:[%s1716_s3 + $0x48] sm:$0xff]  ;;  %v571_v34 = vld [vmem:[%s1719_s6 + $0x30] sm:$0xff] }
  0x49   :  { %861 = vmatmul.mubr.msk.f32.vlgmr.msra.gmra.mrb[0].mxu0 %vm84_vm1, %v1410_v26  ;;  %v575_v40 = vld [vmem:[%s1719_s6 + $0x50] sm:$0xff] }
  0x4a   :  { %930 = vmatprep.mubr.msk.f32.mxu0 %vm1281_vm0, %v1282_v1  ;;  %1064 = vmatpush3.bf16.msra.mxu0 %v1063_v42  ;;  %v388_v42 = vld [vmem:[%s1716_s3 + $0x30] sm:$0xff] }
  0x4b   :  { %1052 = vmatpush3.bf16.msra.mxu1 %v1051_v29  ;;  %1065 = vmatprep.subr.bf16.mxu0 %v1280_v0 }
  0x4c   :  { %1053 = vmatprep.subr.bf16.mxu1 %v1280_v0 }
  0x4e   :  { %1067 = vmatpush3.bf16.msra.mxu0 %v1066_v44  ;;  %v1096_v44 = vpack.c.bf16 %v389_v43, %v388_v42  ;;  %v577_v43 = vld [vmem:[%s1719_s6 + $0x60] sm:$0xff] }
  0x4f   :  { %1055 = vmatpush3.bf16.msra.mxu1 %v1054_v32  ;;  %1068 = vmatprep.subr.bf16.mxu0 %v1280_v0 }
  0x50   :  { %1056 = vmatprep.subr.bf16.mxu1 %v1280_v0 }
  0x52   :  { %1070 = vmatpush3.bf16.msra.mxu0 %v1069_v47  ;;  %v1164_v13 = vpop.eup %1163  ;;  %v1099_v47 = vpack.c.bf16 %v391_v46, %v390_v45  ;;  %v737_v46 = vld [vmem:[%s1720_s7 + $0x2] ss:$0 sm:$0xff] }
  0x53   :  { %1058 = vmatpush3.bf16.msra.mxu1 %v1057_v35  ;;  %1071 = vmatprep.subr.bf16.mxu0 %v1280_v0  ;;  %v359_v14 = vmul.f32 0.6931472, %v1164_v13  ;;  %v384_v35 = vld [vmem:[%s1716_s3 + $0x10] sm:$0xff] }
  0x54   :  { %1059 = vmatprep.subr.bf16.mxu1 %v1280_v0  ;;  %v749_v13 = vld [vmem:[%s1717_s4 + $0xd0] sm:$0xff] }
  0x55   :  { %v360_v15 = vsub.f32 0.0, %v359_v14  ;;  %v750_v14 = vld [vmem:[%s1717_s4 + $0xd8] sm:$0xff] }
  0x56   :  { %1073 = vmatpush3.bf16.msra.mxu0 %v1072_v50 }
  0x57   :  { %1061 = vmatpush3.bf16.msra.mxu1 %v1060_v38  ;;  %1074 = vmatprep.subr.bf16.mxu0 %v1280_v0  ;;  %v361_v16 = vadd.f32 1e-20, %v360_v15  ;;  %v1090_v38 = vpack.c.bf16 %v385_v37, %v384_v35  ;;  %v1117_v15 = vpack.c.bf16 %v750_v14, %v749_v13  ;;  %v572_v35 = vld [vmem:[%s1719_s6 + $0x38] sm:$0xff]  ;;  %v573_v37 = vld [vmem:[%s1719_s6 + $0x40] sm:$0xff] }
  0x58   :  { %1086 = vmatprep.subr.bf16.mxu1 %v1280_v0 }
  0x59   :  { %1165 = vlog2.f32 %v361_v16  ;;  %v751_v16 = vld [vmem:[%s1717_s4 + $0xe0] sm:$0xff] }
  0x5a   :  { %1076 = vmatpush3.bf16.msra.mxu0 %v1075_v53 }
  0x5b   :  { %1077 = vmatprep.subr.bf16.mxu0 %v1280_v0 }
  0x5e   :  { %1079 = vmatpush3.bf16.msra.mxu0 %v1078_v56 }
  0x5f   :  { %1080 = vmatprep.subr.bf16.mxu0 %v1280_v0 }
  0x62   :  { %1082 = vmatpush3.bf16.msra.mxu0 %v1081_v59  ;;  %v739_v59 = vld [vmem:[%s1717_s4 + $0x80] sm:$0xff] }
  0x63   :  { %1083 = vmatprep.subr.bf16.mxu0 %v1280_v0  ;;  %v1166_v17 = vpop.eup %1165 }
  0x64   :  { %v363_v18 = vmul.f32 0.6931472, %v1166_v17  ;;  %v752_v17 = vld [vmem:[%s1717_s4 + $0xe8] sm:$0xff] }
  0x66   :  { %1085 = vmatpush3.bf16.msra.mxu0 %v1084_v5  ;;  %v364_v20 = vsub.f32 0.0, %v363_v18  ;;  %v746_v5 = vld [vmem:[%s1717_s4 + $0xb8] sm:$0xff]  ;;  %v1120_v18 = vpack.c.bf16 %v752_v17, %v751_v16 }
  0x67   :  { %1101 = vmatprep.subr.bf16.mxu0 %v1280_v0 }
 0x11c   :  { %v154_v61 = vpop.f32.mrb[0].mxu0 }
 0x11d   :  { %v155_v62 = vadd.f32 %v733_v60, %v154_v61  ;;  %v862_v63 = vpop.f32.mrb[1].mxu0  ;;  %v740_v60 = vld [vmem:[%s1717_s4 + $0x88] sm:$0xff]  ;;  %v741_v61 = vld [vmem:[%s1717_s4 + $0x90] sm:$0xff] }
 0x11e   :  { %v743_v63 = vld [vmem:[%s1717_s4 + $0xa0] sm:$0xff] }
 0x11f   :  { %v158_v2 = vmax.f32 %v155_v62, 0.0  ;;  %v742_v62 = vld [vmem:[%s1717_s4 + $0x98] sm:$0xff] }
 0x121   :  { %896 = vmatmul.mubr.f32.vlgmr.msra.gmra.mrb[0].mxu1 %v158_v2  ;;  %v744_v2 = vld [vmem:[%s1717_s4 + $0xa8] sm:$0xff] }
 0x122   :  { %953 = vmatprep.mubr.msk.f32.mxu1 %vm1281_vm0, %v1282_v1  ;;  %1088 = vmatpush3.bf16.msra.mxu1 %v1087_v36  ;;  %v1108_v3 = vpack.c.bf16 %v744_v2, %v743_v63  ;;  %v1135_v36 = vpack.c.bf16 %v572_v35, %v571_v34 }
 0x123   :  { %1089 = vmatprep.subr.bf16.mxu1 %v1280_v0 }
 0x126   :  { %1091 = vmatpush3.bf16.msra.mxu1 %v1090_v38  ;;  %v574_v38 = vld [vmem:[%s1719_s6 + $0x48] sm:$0xff] }
 0x127   :  { %1092 = vmatprep.subr.bf16.mxu1 %v1280_v0  ;;  %v1138_v39 = vpack.c.bf16 %v574_v38, %v573_v37 }
 0x12a   :  { %1094 = vmatpush3.bf16.msra.mxu1 %v1093_v41  ;;  %v576_v41 = vld [vmem:[%s1719_s6 + $0x58] sm:$0xff] }
 0x12b   :  { %1095 = vmatprep.subr.bf16.mxu1 %v1280_v0  ;;  %v1141_v42 = vpack.c.bf16 %v576_v41, %v575_v40 }
 0x12e   :  { %1097 = vmatpush3.bf16.msra.mxu1 %v1096_v44  ;;  %v578_v44 = vld [vmem:[%s1719_s6 + $0x68] sm:$0xff] }
 0x12f   :  { %1098 = vmatprep.subr.bf16.mxu1 %v1280_v0  ;;  %v1144_v45 = vpack.c.bf16 %v578_v44, %v577_v43 }
 0x132   :  { %1100 = vmatpush3.bf16.msra.mxu1 %v1099_v47 }
 0x133   :  { %1125 = vmatprep.subr.bf16.mxu1 %v1280_v0 }
 0x1f4   :  { %v246_v7 = vpop.f32.mrb[0].mxu1 }
 0x1f5   :  { %v247_v8 = vadd.f32 %v735_v6, %v246_v7  ;;  %v897_v9 = vpop.f32.mrb[1].mxu1 }
 0x1f6   :  { %v747_v9 = vld [vmem:[%s1717_s4 + $0xc0] sm:$0xff] }
 0x1f7   :  { %v250_v10 = vmax.f32 %v247_v8, 0.0  ;;  %v1111_v8 = vpack.c.bf16 %v746_v5, %v745_v4 }
 0x1f9   :  { %931 = vmatmul.mubr.f32.vlgmr.msra.gmra.mrb[2].mxu0 %v250_v10  ;;  %v748_v10 = vld [vmem:[%s1717_s4 + $0xc8] sm:$0xff] }
 0x1fa   :  { %988 = vmatprep.mubr.msk.f32.mxu0 %vm1281_vm0, %v1282_v1  ;;  %v1114_v12 = vpack.c.bf16 %v748_v10, %v747_v9 }
 0x2cc   :  { %v340_v21 = vpop.f32.mrb[2].mxu0 }
 0x2cd   :  { %v1522_v22 = vadd.f32 %v1519_v19, %v340_v21  ;;  %v932_v23 = vpop.f32.mrb[3].mxu0  ;;  %v754_v21 = vld [vmem:[%s1717_s4 + $0xf8] sm:$0xff] }
 0x2cf   :  { %v365_v24 = vadd.f32 %v364_v20, %v1522_v22  ;;  %v345_v32 = vsel %vm344_vm2, %v1522_v22, -inf  ;;  %v753_v20 = vld [vmem:[%s1717_s4 + $0xf0] sm:$0xff] }
 0x2d0   :  { %v1123_v23 = vpack.c.bf16 %v754_v21, %v753_v20 }
 0x2d1   :  { %v366_v25 = vsel %vm344_vm2, %v365_v24, -inf }
 0x2d2   :  { %367 = vmax.xlane.f32.xlu0 %v366_v25  ;;  %v566_v25 = vld [vmem:[%s1719_s6 + $0x8] sm:$0xff] }
 0x35f   :  { %v368_v27 = vpop.xlane.xlu0 %367 }
 0x360   :  { %v369_v28 = vsub.f32 %v365_v24, %v368_v27  ;;  %v565_v24 = vld [vmem:[%s1719_s6] sm:$0xff]  ;;  %v567_v27 = vld [vmem:[%s1719_s6 + $0x10] sm:$0xff] }
 0x362   :  { %v370_v29 = vmul.f32 1.442695, %v369_v28  ;;  %v1126_v28 = vpack.c.bf16 %v566_v25, %v565_v24 }
 0x364   :  { %1167 = vpow2.f32 %v370_v29  ;;  %v568_v29 = vld [vmem:[%s1719_s6 + $0x18] sm:$0xff] }
 0x36e   :  { %v1168_v30 = vpop.eup %1167 }
 0x36f   :  { %v372_v31 = vsel %vm344_vm2, %v1168_v30, 0.0 }
 0x370   :  { %373 = vadd.xlane.f32.xlu0 %v372_v31  ;;  %v569_v31 = vld [vmem:[%s1719_s6 + $0x20] sm:$0xff] }
 0x374   :  { %346 = vmax.xlane.f32.xlu0 %v345_v32  ;;  %v570_v32 = vld [vmem:[%s1719_s6 + $0x28] sm:$0xff] }
 0x375   :  { %v1132_v33 = vpack.c.bf16 %v570_v32, %v569_v31 }
 0x3fd   :  { %v374_v48 = vpop.xlane.xlu0 %373 }
 0x3fe   :  { %1169 = vrcp.f32 %v374_v48 }
 0x401   :  { %v347_v49 = vpop.xlane.xlu0 %346 }
 0x402   :  { %v348_v50 = vsub.f32 %v1522_v22, %v347_v49 }
 0x404   :  { %v349_v51 = vmul.f32 1.442695, %v348_v50 }
 0x406   :  { %1171 = vpow2.f32 %v349_v51  ;;  %v579_v51 = vld [vmem:[%s1719_s6 + $0x70] sm:$0xff] }
 0x408   :  { %v1170_v52 = vpop.eup %1169 }
 0x409   :  { %v1565_v53 = vmul.f32 %v1170_v52, %v1168_v30  ;;  %v1129_v30 = vpack.c.bf16 %v568_v29, %v567_v27  ;;  %v580_v52 = vld [vmem:[%s1719_s6 + $0x78] sm:$0xff]  ;;  %s1286_s6 = smov 32  }
 0x40b   :  { %378 = vrot.lane.b32.xlu1 %v1565_v53, %s1283_s18 }
 0x40f   :  { %581 = vrot.lane.b32.xlu1 %v1519_v19, %s1285_s25 }
 0x410   :  { %v1172_v54 = vpop.eup %1171 }
 0x411   :  { %v351_v55 = vsel %vm344_vm2, %v1172_v54, 0.0 }
 0x412   :  { %352 = vadd.xlane.f32.xlu0 %v351_v55 }
 0x47d   :  { %v379_v56 = vpop.permute.xlu1 %378 }
 0x47e   :  { %v381_v57 = vsel %vm84_vm1, %v1410_v26, %v379_v56  ;;  %v1102_v26 = vpack.c.bf16 %v740_v60, %v739_v59 }
 0x47f   :  { %954 = vmatmul.mubr.msk.f32.vlgmr.msra.gmra.mrb[2].mxu1 %vm397_vm3, %v381_v57 }
 0x480   :  { %1023 = vmatprep.mubr.msk.f32.mxu1 %vm1281_vm0, %v1282_v1  ;;  %1103 = vmatpush3.bf16.msra.mxu0 %v1102_v26  ;;  %v1105_v1 = vpack.c.bf16 %v742_v62, %v741_v61 }
 0x481   :  { %1104 = vmatprep.subr.bf16.mxu0 %v1280_v0  ;;  %1127 = vmatpush3.bf16.msra.mxu1 %v1126_v28  ;;  %v582_v59 = vpop.permute.xlu1 %581 }
 0x482   :  { %1128 = vmatprep.subr.bf16.mxu1 %v1280_v0 }
 0x484   :  { %1106 = vmatpush3.bf16.msra.mxu0 %v1105_v1 }
 0x485   :  { %1107 = vmatprep.subr.bf16.mxu0 %v1280_v0  ;;  %1130 = vmatpush3.bf16.msra.mxu1 %v1129_v30 }
 0x486   :  { %1131 = vmatprep.subr.bf16.mxu1 %v1280_v0 }
 0x488   :  { %1109 = vmatpush3.bf16.msra.mxu0 %v1108_v3 }
 0x489   :  { %1110 = vmatprep.subr.bf16.mxu0 %v1280_v0  ;;  %1133 = vmatpush3.bf16.msra.mxu1 %v1132_v33 }
 0x48a   :  { %1134 = vmatprep.subr.bf16.mxu1 %v1280_v0 }
 0x48c   :  { %1112 = vmatpush3.bf16.msra.mxu0 %v1111_v8 }
 0x48d   :  { %1113 = vmatprep.subr.bf16.mxu0 %v1280_v0  ;;  %1136 = vmatpush3.bf16.msra.mxu1 %v1135_v36 }
 0x48e   :  { %1137 = vmatprep.subr.bf16.mxu1 %v1280_v0 }
 0x490   :  { %1115 = vmatpush3.bf16.msra.mxu0 %v1114_v12 }
 0x491   :  { %1116 = vmatprep.subr.bf16.mxu0 %v1280_v0  ;;  %1139 = vmatpush3.bf16.msra.mxu1 %v1138_v39 }
 0x492   :  { %1140 = vmatprep.subr.bf16.mxu1 %v1280_v0 }
 0x494   :  { %1118 = vmatpush3.bf16.msra.mxu0 %v1117_v15 }
 0x495   :  { %1119 = vmatprep.subr.bf16.mxu0 %v1280_v0  ;;  %1142 = vmatpush3.bf16.msra.mxu1 %v1141_v42 }
 0x496   :  { %1143 = vmatprep.subr.bf16.mxu1 %v1280_v0 }
 0x498   :  { %1121 = vmatpush3.bf16.msra.mxu0 %v1120_v18 }
 0x499   :  { %1122 = vmatprep.subr.bf16.mxu0 %v1280_v0  ;;  %1145 = vmatpush3.bf16.msra.mxu1 %v1144_v45 }
 0x49a   :  { %1146 = vmatprep.subr.bf16.mxu1 %v1280_v0  ;;  %v755_v0 = vld [vmem:[%s1720_s7 + $0x3] ss:$0 sm:$0xff]  ;;  %s1287_s7 = smov 48  }
 0x49c   :  { %1124 = vmatpush3.bf16.msra.mxu0 %v1123_v23 }
 0x49f   :  { %v353_v58 = vpop.xlane.xlu0 %352 }
 0x4a0   :  { %1173 = vrcp.f32 %v353_v58 }
 0x4aa   :  { %v1174_v6 = vpop.eup %1173 }
 0x4ab   :  { %v355_v7 = vmul.f32 %v1174_v6, %v1172_v54  ;;  %v1147_v54 = vpack.c.bf16 %v580_v52, %v579_v51 }
 0x4ad   :  { %688 = vrot.lane.b32.xlu0 %v355_v7, %s1284_s11  ;;  %1148 = vmatpush3.bf16.msra.mxu1 %v1147_v54 }
 0x51f   :  { %v689_v28 = vpop.permute.xlu0 %688 }
 0x552   :  { %v467_v47 = vpop.f32.mrb[2].mxu1 }
 0x553   :  { %v468_v48 = vadd.f32 %v737_v46, %v467_v47  ;;  %v955_v49 = vpop.f32.mrb[3].mxu1 }
 0x555   :  { %v471_v50 = vmax.f32 %v468_v48, 0.0 }
 0x557   :  { %989 = vmatmul.mubr.f32.vlgmr.msra.gmra.mrb[4].mxu0 %v471_v50 }
 0x62a   :  { %v560_v55 = vpop.f32.mrb[4].mxu0 }
 0x62b   :  { %v561_v56 = vadd.f32 %v755_v0, %v560_v55  ;;  %v990_v57 = vpop.f32.mrb[5].mxu0 }
 0x62d   :  { %v564_v58 = vmax.f32 %v561_v56, 0.0 }
 0x62f   :  { %1024 = vmatmul.mubr.f32.vlgmr.msra.gmra.mrb[4].mxu1 %v564_v58 }
 0x702   :  { %v650_v60 = vpop.f32.mrb[4].mxu1 }
 0x703   :  { %v651_v61 = vadd.f32 %v650_v60, %v582_v59  ;;  %v1025_v26 = vpop.f32.mrb[5].mxu1 }
 0x705   :  { %v655_v62 = vand.u32 2147483647, %v651_v61  ;;  %v654_v9 = vmax.f32 %v651_v61, 0.0 }
 0x707   :  { %v656_v1 = vsub.f32 0.0, %v655_v62 }
 0x709   :  { %v657_v63 = vmul.f32 1.442695, %v656_v1 }
 0x70b   :  { %1175 = vpow2.f32 %v657_v63 }
 0x715   :  { %v1176_v2 = vpop.eup %1175 }
 0x716   :  { %v659_v3 = vadd.f32 1.0, %v1176_v2  ;;  %v662_v19 = vmul.f32 -0.5, %v1176_v2  ;;  %v665_v5 = vand.u32 2147483647, %v1176_v2 }
 0x718   :  { %1177 = vlog2.f32 %v659_v3  ;;  %v663_v4 = vadd.f32 1.0, %v662_v19  ;;  %vm666_vm4 = vcmp.lt.f32.partialorder %v665_v5, 0.0004427343 }
 0x71a   :  { %v664_v8 = vmul.f32 %v1176_v2, %v663_v4 }
 0x722   :  { %v1178_v6 = vpop.eup %1177 }
 0x723   :  { %v661_v7 = vmul.f32 0.6931472, %v1178_v6 }
 0x725   :  { %v667_v10 = vsel %vm666_vm4, %v664_v8, %v661_v7 }
 0x726   :  { %v668_v12 = vadd.f32 %v667_v10, %v654_v9 }
 0x728   :  { %v669_v13 = vadd.f32 1e-10, %v668_v12 }
 0x72a   :  { %1179 = vrsqrt.f32 %v669_v13  ;;  %vm672_vm5 = vcmp.eq.f32.partialorder %v669_v13, inf  ;;  %v675_v16 = vand.u32 2147483648, %v669_v13  ;;  %vm674_vm6 = vcmp.eq.f32.partialorder %v669_v13, 0.0 }
 0x734   :  { %v1180_v14 = vpop.eup %1179 }
 0x735   :  { %v671_v15 = vmul.f32 %v1180_v14, %v669_v13 }
 0x737   :  { %v673_v17 = vsel %vm672_vm5, %v669_v13, %v671_v15 }
 0x738   :  { %v676_v18 = vsel %vm674_vm6, %v675_v16, %v673_v17 }
 0x739   :  { %678 = vrot.lane.b32.xlu1 %v676_v18, %s1285_s25 }
 0x7ab   :  { %v679_v20 = vpop.permute.xlu1 %678 }
 0x7ac   :  { %v681_v21 = vmul.f32 %v679_v20, %v1513_v11  ;;  %v706_v11 = vsel %vm344_vm2, %v1522_v22, %v689_v28 }
 0x7ae   :  { %683 = vrot.lane.b32.xlu1 %v681_v21, %s1285_s25 }
 0x7b2   :  { %691 = vrot.lane.b32.xlu1 %v1565_v53, %s1286_s6 }
 0x7b6   :  { %695 = vrot.lane.b32.xlu1 %v651_v61, %s1287_s7 }
 0x7ba   :  { %699 = vrot.lane.b32.xlu1 %v668_v12, %s1287_s7 }
 0x820   :  { %v684_v23 = vpop.permute.xlu1 %683 }
 0x821   :  { %v686_v24 = vadd.f32 %v684_v23, %v651_v61 }
 0x823   :  { %703 = vrot.lane.b32.xlu1 %v686_v24, %s1285_s25 }
 0x824   :  { %v692_v25 = vpop.permute.xlu1 %691 }
 0x825   :  { %v708_v30 = vsel %vm707_vm7, %v706_v11, %v692_v25 }
 0x828   :  { %v696_v27 = vpop.permute.xlu1 %695 }
 0x829   :  { %v710_v53 = vsel %vm709_vm8, %v708_v30, %v696_v27 }
 0x82c   :  { %v700_v29 = vpop.permute.xlu1 %699 }
 0x82d   :  { %v711_v31 = vsel %vm397_vm3, %v710_v53, %v700_v29 }
 0x895   :  { %v704_v32 = vpop.permute.xlu1 %703 }
 0x896   :  { %v713_v33 = vsel %vm712_vm9, %v711_v31, %v704_v32  ;;  %v714_v34 = vsel %vm344_vm2, %v704_v32, 0.0 }
 0x897   :  { %715 = vst [vmem:[#allocation8] sm:$0xff] %v713_v33  ;;  %716 = vst [vmem:[#allocation8 + $0x8] sm:$0xff] %v714_v34 }
 0x898   :  { %1258 = shalt.err (!%p1255_p0)
}
 0x899   :  { %s1259_s10 = scalar_lea.hbm %s1722_s9, 256 }
 0x89a   :  { %p1260_p1 = scmp.ne.s32.totalorder %s1722_s9, %s1259_s10  ;;  %p1263_p2 = scmp.lt.u32.totalorder %s1259_s10, %s1722_s9 }
 0x89c   :  { %p1265_p3 = pnand %p1263_p2, %p1260_p1 }
 0x89e   :  { %1268 = shalt.err (!%p1265_p3)
}
 0x89f   :  { %726 = dma.vmem_to_hbm [thread:$0]  %s724_s28, 256, %s1722_s9, [#allocation4]  }
 0x8a0   :  { %1273 = dma.done.wait [#allocation4], 256  }
 0x8a1   :  { %1274 = vsyncadd [#allocation4], 4294967040 }
 0x8a2   :  { %730 = vsyncpa [#allocation3], 1 }
 0x8a3   :  { %731 = vsyncpa [#allocation6], 1 }
 0x8a4   :  { %732 = vsyncpa [#allocation4], 1 }

</bundles_post_ra>
